<compile_context>
chip_gen: v7x
topology: tpu7x:2x2x1
jax: 0.10.0
libtpu: 0.0.40
codegen_flags: <defaults>
</compile_context>

<pallas_src>
import functools

import jax
import jax.numpy as jnp
from jax import lax
from jax.experimental import pallas as pl
from jax.experimental.pallas import tpu as pltpu

_LANE = 128      # TPU lane width
_SUBLANE = 8     # TPU sublane width


def _round_up(x: int, m: int) -> int:
    return (x + m - 1) // m * m


def _physical_vmem_bytes() -> int:
    """Per-core physical VMEM; conservative 64 MiB (v7x) if the query fails."""
    try:
        return int(pltpu.get_tpu_info().vmem_capacity_bytes)
    except Exception:
        return 64 << 20


def _choose_tb(num_idx: int, row_bytes: int) -> int:
    """Rows gathered per grid step for the one-hot path.

    Target ~1 MiB output tiles (amortizes the ~0.35 us/step overhead against
    the HBM writeback), capped at 2048 rows, but shrink for small lookups so
    there are always >= 2 grid blocks (both v7x TensorCores get work).
    """
    tb = max(256, min(2048, (1 << 20) // max(row_bytes, 1)))
    tb = _round_up(tb, _SUBLANE)
    if num_idx < 2 * tb:
        tb = max(_SUBLANE, _round_up(pl.cdiv(num_idx, 2), _SUBLANE))
    return tb


# ---------------------------------------------------------------------------
# Path 1: VMEM-resident table, one-hot MXU gather.
# ---------------------------------------------------------------------------
def _onehot_gather_kernel(idx_ref, table_ref, out_ref):
    """Gather TB table rows via a one-hot @ table matmul on the MXU.

    idx_ref   : VMEM (TB, 1) int32        -- clamped node ids for this tile
    table_ref : VMEM (N_pad, D_pad) f32   -- whole padded table (resident)
    out_ref   : VMEM (TB, D_pad) f32      -- gathered rows (lane-dense)
    """
    tb = out_ref.shape[0]
    n_pad = table_ref.shape[0]
    idx = idx_ref[...]                                            # (TB, 1)
    node_iota = lax.broadcasted_iota(jnp.int32, (tb, n_pad), 1)   # (TB, N_pad)
    onehot = (idx == node_iota).astype(table_ref.dtype)           # (TB, N_pad)
    out_ref[...] = jnp.dot(
        onehot,
        table_ref[...],
        preferred_element_type=jnp.float32,
        precision=lax.Precision.HIGHEST,   # exact: output == stored f32 rows
    ).astype(out_ref.dtype)


def _onehot_path(idx_col, table_p, tb, num_blocks, vmem_limit):
    num_idx_pad = num_blocks * tb
    n_pad, d_pad = table_p.shape
    return pl.pallas_call(
        _onehot_gather_kernel,
        out_shape=jax.ShapeDtypeStruct((num_idx_pad, d_pad), table_p.dtype),
        grid=(num_blocks,),
        in_specs=[
            # node ids for this tile, laid out along sublanes
            pl.BlockSpec((tb, 1), lambda i: (i, 0)),
            # whole table, resident every step: constant index map + single
            # buffer (default double buffer would be pure VMEM waste)
            pl.BlockSpec((n_pad, d_pad), lambda i: (0, 0),
                         pipeline_mode=pl.Buffered(1)),
        ],
        out_specs=pl.BlockSpec((tb, d_pad), lambda i: (i, 0)),
        compiler_params=pltpu.CompilerParams(
            dimension_semantics=("parallel",),   # disjoint output tiles
            vmem_limit_bytes=vmem_limit,
        ),
    )(idx_col, table_p)


# ---------------------------------------------------------------------------
# Path 2: table stays in HBM, per-row DMA gather (fallback for large tables).
# ---------------------------------------------------------------------------
def _dma_row_gather_kernel(idx_smem, table_hbm, out_ref, row_buf, sem):
    """Gather TB rows of the HBM-resident table into the output tile.

    idx_smem  : SMEM (num_idx_pad,) int32  -- all clamped node ids (prefetched)
    table_hbm : HBM  (num_nodes, D_pad)    -- not auto-pipelined
    out_ref   : VMEM (TB, D_pad)           -- gathered rows for this tile
    row_buf   : VMEM (1, D_pad) scratch    -- DMA staging buffer
    sem       : DMA semaphore
    """
    tb = out_ref.shape[0]
    base = pl.program_id(0) * tb

    def body(r, carry):
        row_id = idx_smem[base + r]
        cp = pltpu.make_async_copy(
            table_hbm.at[pl.ds(row_id, 1), :], row_buf, sem)
        cp.start()
        cp.wait()
        out_ref[pl.ds(r, 1), :] = row_buf[...]
        return carry

    lax.fori_loop(0, tb, body, 0)
    # TODO(synk): double-buffer the row DMAs (prefetch row r+1 while storing r).


def _hbm_path(idx_flat, table_cp, tb, num_blocks, vmem_limit):
    num_idx_pad = num_blocks * tb
    _, d_pad = table_cp.shape
    grid_spec = pltpu.PrefetchScalarGridSpec(
        num_scalar_prefetch=1,
        grid=(num_blocks,),
        in_specs=[pl.BlockSpec(memory_space=pl.ANY)],    # table stays in HBM
        out_specs=pl.BlockSpec((tb, d_pad), lambda i, idx: (i, 0)),
        scratch_shapes=[
            pltpu.VMEM((1, d_pad), table_cp.dtype),
            pltpu.SemaphoreType.DMA(()),
        ],
    )
    return pl.pallas_call(
        _dma_row_gather_kernel,
        out_shape=jax.ShapeDtypeStruct((num_idx_pad, d_pad), table_cp.dtype),
        grid_spec=grid_spec,
        compiler_params=pltpu.CompilerParams(
            dimension_semantics=("arbitrary",),
            vmem_limit_bytes=vmem_limit,
        ),
    )(idx_flat, table_cp)


# ---------------------------------------------------------------------------
# Wrapper with per-generation-safe dispatch.
# ---------------------------------------------------------------------------
def node2vec_forward(indices: jax.Array, table: jax.Array,
                     *, force_hbm_path: bool = False) -> jax.Array:
    """Pallas implementation of Node2Vec.forward (nn.Embedding lookup)."""
    num_nodes, emb_dim = table.shape
    in_shape = indices.shape
    itemsize = jnp.dtype(table.dtype).itemsize

    n_pad = _round_up(num_nodes, _LANE)
    d_pad = _round_up(emb_dim, _LANE)

    # Flatten + clamp (defined behavior for any id; nn.Embedding would raise).
    flat_idx = jnp.clip(indices.reshape(-1).astype(jnp.int32), 0, num_nodes - 1)
    num_idx = flat_idx.shape[0]

    phys_vmem = _physical_vmem_bytes()
    vmem_budget = phys_vmem - (4 << 20)          # leave compiler headroom

    # Fast-path sizing: resident table (single-buffered) + tiles + margin.
    tb = _choose_tb(num_idx, d_pad * itemsize)
    table_bytes = n_pad * d_pad * itemsize       # Buffered(1): counted once
    out_tile_bytes = tb * d_pad * itemsize       # double-buffered output
    idx_tile_bytes = tb * _LANE * 4              # (TB,1) i32 pads to 128 lanes
    vmem_need = table_bytes + 2 * out_tile_bytes + 2 * idx_tile_bytes + (2 << 20)

    use_onehot = (not force_hbm_path) and (vmem_need <= vmem_budget)
    # TODO(synk): also dispatch on the MXU-vs-DMA compute crossover (lower on
    # v5e than v6e/v7x) once the HBM path pipelines its row DMAs.

    if use_onehot:
        num_blocks = pl.cdiv(num_idx, tb)
        num_idx_pad = num_blocks * tb
        idx_col = jnp.pad(flat_idx, (0, num_idx_pad - num_idx)).reshape(
            num_idx_pad, 1)
        # Zero-pad the table to lane-aligned shape; padded rows are never
        # selected (ids are clamped), padded columns are sliced off below.
        table_p = jnp.pad(table, ((0, n_pad - num_nodes), (0, d_pad - emb_dim)))
        vmem_limit = int(min(vmem_budget, max(vmem_need, 32 << 20)))
        out_flat = _onehot_path(idx_col, table_p, tb, num_blocks, vmem_limit)
    else:
        tb = max(_SUBLANE, min(256, _round_up(pl.cdiv(num_idx, 2), _SUBLANE)))
        num_blocks = pl.cdiv(num_idx, tb)
        num_idx_pad = num_blocks * tb
        idx_flat = jnp.pad(flat_idx, (0, num_idx_pad - num_idx))
        table_cp = jnp.pad(table, ((0, 0), (0, d_pad - emb_dim)))
        need = 2 * tb * d_pad * itemsize + d_pad * itemsize + (8 << 20)
        vmem_limit = int(min(vmem_budget, max(need, 32 << 20)))
        out_flat = _hbm_path(idx_flat, table_cp, tb, num_blocks, vmem_limit)

    return out_flat[:num_idx, :emb_dim].reshape(*in_shape, emb_dim)


def make_node2vec_params(key, in_dim: int, emb_dim: int) -> jax.Array:
    """Matches Node2Vec._normalize_parameters: row-L2-normalized gaussian."""
    w = jax.random.normal(key, (in_dim, emb_dim), dtype=jnp.float32)
    norm = jnp.sqrt(jnp.sum(w * w, axis=1, keepdims=True))
    return w / jnp.maximum(norm, 1e-12)


if __name__ == "__main__":
    key = jax.random.PRNGKey(0)
    k_w, k_x = jax.random.split(key)

    in_dim = 64     # number of nodes
    emb_dim = 32    # embedding dimension
    B, S = 2, 8     # batch of node-id sequences (random-walk windows)

    table = make_node2vec_params(k_w, in_dim, emb_dim)
    x = jax.random.randint(k_x, (B, S), 0, in_dim, dtype=jnp.int32)

    ref = jnp.take(table, x, axis=0)

    # Fast path: VMEM-resident one-hot MXU gather.
    fwd = jax.jit(node2vec_forward)
    out = jax.block_until_ready(fwd(x, table))
    assert out.shape == (B, S, emb_dim)
    assert jnp.allclose(out, ref, atol=1e-6), "one-hot path mismatch"

    # Fallback path: HBM table + per-row DMA gather (forced, to verify it too).
    fwd_hbm = jax.jit(functools.partial(node2vec_forward, force_hbm_path=True))
    out_hbm = jax.block_until_ready(fwd_hbm(x, table))
    assert out_hbm.shape == (B, S, emb_dim)
    assert jnp.allclose(out_hbm, ref, atol=1e-6), "HBM DMA path mismatch"

    print("KERNEL_OK")
</pallas_src>

<mosaic_0001>
module attributes {stable_mosaic.version = 11 : i64} {
  func.func @_onehot_gather_kernel(%arg0: i32, %arg1: memref<8x1xi32, #tpu.memory_space<vmem>>, %arg2: memref<128x128xf32, #tpu.memory_space<vmem>>, %arg3: memref<8x128xf32, #tpu.memory_space<vmem>>) attributes {dimension_semantics = [#tpu.dimension_semantics<parallel>], iteration_bounds = array<i64: 2>, scalar_prefetch = 0 : i64, scratch_operands = 0 : i64, tpu.core_type = #tpu.core_type<tc>, window_params = [{transform_indices = @transform_0, window_bounds = array<i64: 8, 1>}, {pipeline_mode = #tpu.pipeline_mode<synchronous>, transform_indices = @transform_1, window_bounds = array<i64: 128, 128>}, {transform_indices = @transform_2, window_bounds = array<i64: 8, 128>}]} {
    %c0 = arith.constant 0 : index
    %c0_0 = arith.constant 0 : index
    %0 = vector.load %arg1[%c0, %c0_0] : memref<8x1xi32, #tpu.memory_space<vmem>>, vector<8x1xi32>
    %1 = tpu.iota {dimensions = array<i32: 1>} : vector<8x128xi32>
    %2 = vector.broadcast %0 : vector<8x1xi32> to vector<8x128xi32>
    %3 = arith.cmpi eq, %2, %1 : vector<8x128xi32>
    %4 = arith.extui %3 : vector<8x128xi1> to vector<8x128xi32>
    %5 = arith.sitofp %4 : vector<8x128xi32> to vector<8x128xf32>
    %c0_1 = arith.constant 0 : index
    %c0_2 = arith.constant 0 : index
    %6 = vector.load %arg2[%c0_1, %c0_2] : memref<128x128xf32, #tpu.memory_space<vmem>>, vector<128x128xf32>
    %cst = arith.constant dense<0.000000e+00> : vector<8x128xf32>
    %7 = tpu.matmul %5, %6, %cst {dimension_numbers = #tpu.dot_dimension_numbers<[1], [0], [0], [1], [0, 0, 1, 1], [], []>, precision = #tpu.contract_precision<fp32>} : vector<8x128xf32>, vector<128x128xf32>, vector<8x128xf32> -> vector<8x128xf32>
    %c0_3 = arith.constant 0 : index
    %c0_4 = arith.constant 0 : index
    %8 = vector.load %arg3[%c0_3, %c0_4] : memref<8x128xf32, #tpu.memory_space<vmem>>, vector<8x128xf32>
    tpu.vector_store %arg3[%c0_3, %c0_4], %7 {strides = array<i32>} : memref<8x128xf32, #tpu.memory_space<vmem>>, vector<8x128xf32>,
    return
  }
  func.func @transform_0(%arg0: i32) -> (i32, i32) {
    %c0_i32 = arith.constant 0 : i32
    %c0_i32_0 = arith.constant 0 : i32
    return %arg0, %c0_i32 : i32, i32
  }
  func.func @transform_1(%arg0: i32) -> (i32, i32) {
    %c0_i32 = arith.constant 0 : i32
    %c0_i32_0 = arith.constant 0 : i32
    %c0_i32_1 = arith.constant 0 : i32
    return %c0_i32, %c0_i32_0 : i32, i32
  }
  func.func @transform_2(%arg0: i32) -> (i32, i32) {
    %c0_i32 = arith.constant 0 : i32
    %c0_i32_0 = arith.constant 0 : i32
    return %arg0, %c0_i32 : i32, i32
  }
}

</mosaic_0001>

<bundles_post_ra>
// kernel: node2vec_forward.1
= control target key start
LH: loop header
LB: loop body
LE: loop exit
PB: predicated region body
PF: predicated region fallthrough
CT: control target
= control target key end

     0   :  { %s1379_s9 = smov 0   ;;  %s1759_s0 = inlined_call_operand.vmem [shape: s32[16,1], index: 0, kind: input, shape index: {}]   ;;  %s1760_s1 = inlined_call_operand.vmem [shape: f32[128,128], index: 1, kind: input, shape index: {}]   ;;  %s1761_s2 = inlined_call_operand.vmem [shape: f32[16,128], index: 2, kind: output, shape index: {}]  }
   0x1 LB: > { %s859_s10 = sadd.s32 4294967295, %s1357_s9   ;;  %p863_p0 = scmp.ge.s32.totalorder %s1357_s9, 1  ;;  %s1357_s9 = sphi %s1379_s9, %s12_s9  }
   0x2   : > { %p111_p1 = scmp.lt.s32.totalorder %s1357_s9, 3 }
   0x4   : > { %p112_p2 = pnand %p863_p0, %p111_p1 }
   0x5   : > { %p1387_p3 = scmp.lt.s32.totalorder (!%p112_p2), %s859_s10, 1  ;;  %v148_v0 = vld [vmem:[%s1760_s1] sm:$0xff] (!%p112_p2)  ;;  %v149_v1 = vld [vmem:[%s1760_s1 + $0x8] sm:$0xff] (!%p112_p2)  ;;  %v150_v2 = vld [vmem:[%s1760_s1 + $0x10] sm:$0xff] (!%p112_p2)  ;;  %v1359_v3 = vmov (!%p112_p2), 0   ;;  %v1360_v4 = vmov (!%p112_p2), 0.0|0.0  }
   0x6   : > { %115 = sbr.rel (%p112_p2) target bundleno = 434 (0x1b2), region = 28  ;;  %1350 = vset.pattern.permute.xlu0 (!%p112_p2), %v1359_v3  ;;  %1256 = vmatprep.subr.bf16.mxu0 (!%p112_p2), %v1360_v4  ;;  %v165_v5 = vand.u32 (!%p112_p2), 4294901760, %v148_v0  ;;  %v168_v6 = vand.u32 (!%p112_p2), 4294901760, %v149_v1  ;;  %v151_v7 = vld [vmem:[%s1760_s1 + $0x18] sm:$0xff] (!%p112_p2)  ;;  %v171_v8 = vand.u32 (!%p112_p2), 4294901760, %v150_v2  ;;  %v152_v9 = vld [vmem:[%s1760_s1 + $0x20] sm:$0xff] (!%p112_p2) }
   0x7   : > { %v153_v10 = vld [vmem:[%s1760_s1 + $0x28] sm:$0xff] (!%p112_p2)  ;;  %1184 = vmatprep.subr.bf16.mxu1 (!%p112_p2), %v1360_v4  ;;  %v174_v11 = vand.u32 (!%p112_p2), 4294901760, %v151_v7  ;;  %v177_v12 = vand.u32 (!%p112_p2), 4294901760, %v152_v9  ;;  %v154_v14 = vld [vmem:[%s1760_s1 + $0x30] sm:$0xff] (!%p112_p2)  ;;  %v155_v15 = vld [vmem:[%s1760_s1 + $0x38] sm:$0xff] (!%p112_p2)  ;;  %vm1361_vm0 = vmmov (!%p112_p2), 0  }
   0x8   : > { %v180_v13 = vand.u32 (!%p112_p2), 4294901760, %v153_v10  ;;  %v1421_v16 = vpack.c.bf16 (!%p112_p2), %v168_v6, %v165_v5  ;;  %v1423_v17 = vsub.f32 (!%p112_p2), %v148_v0, %v165_v5  ;;  %v1425_v18 = vsub.f32 (!%p112_p2), %v149_v1, %v168_v6  ;;  %v1432_v20 = vld [vmem:[%s1760_s1 + $0x40] sm:$0xff] (!%p112_p2)  ;;  %v1437_v21 = vld [vmem:[%s1760_s1 + $0x48] sm:$0xff] (!%p112_p2)  ;;  %v1442_v22 = vld [vmem:[%s1760_s1 + $0x50] sm:$0xff] (!%p112_p2) }
   0x9   : > { %v1427_v19 = vsub.f32 (!%p112_p2), %v150_v2, %v171_v8  ;;  %v1445_v23 = vpack.c.bf16 (!%p112_p2), %v174_v11, %v171_v8  ;;  %v1447_v24 = vsub.f32 (!%p112_p2), %v151_v7, %v174_v11  ;;  %v1449_v25 = vsub.f32 (!%p112_p2), %v152_v9, %v177_v12  ;;  %v1454_v26 = vld [vmem:[%s1760_s1 + $0x58] sm:$0xff] (!%p112_p2)  ;;  %v1459_v27 = vld [vmem:[%s1760_s1 + $0x60] sm:$0xff] (!%p112_p2)  ;;  %v1479_v36 = vld [vmem:[%s1760_s1 + $0x68] sm:$0xff] (!%p112_p2) }
   0xa   : > { %1258 = vmatpush3.bf16.msra.mxu0 (!%p112_p2), %v1421_v16  ;;  %1186 = vmatpush3.bf16.msra.mxu1 (!%p112_p2), %v1421_v16  ;;  %v1468_v28 = vsub.f32 (!%p112_p2), %v153_v10, %v180_v13  ;;  %v183_v29 = vand.u32 (!%p112_p2), 4294901760, %v154_v14  ;;  %v186_v30 = vand.u32 (!%p112_p2), 4294901760, %v155_v15  ;;  %v189_v31 = vand.u32 (!%p112_p2), 4294901760, %v1432_v20  ;;  %v1492_v41 = vld [vmem:[%s1760_s1 + $0x70] sm:$0xff] (!%p112_p2)  ;;  %v1497_v42 = vld [vmem:[%s1760_s1 + $0x78] sm:$0xff] (!%p112_p2) }
   0xb   : > { %1259 = vmatprep.subr.bf16.mxu0 (!%p112_p2), %v1360_v4  ;;  %1187 = vmatprep.subr.bf16.mxu1 (!%p112_p2), %v1360_v4  ;;  %v192_v33 = vand.u32 (!%p112_p2), 4294901760, %v1437_v21  ;;  %v195_v34 = vand.u32 (!%p112_p2), 4294901760, %v1442_v22  ;;  %v198_v35 = vand.u32 (!%p112_p2), 4294901760, %v1454_v26  ;;  %v201_v40 = vand.u32 (!%p112_p2), 4294901760, %v1459_v27 }
   0xc   : > { %v1481_v37 = vsub.f32 (!%p112_p2), %v154_v14, %v183_v29  ;;  %v1483_v38 = vsub.f32 (!%p112_p2), %v155_v15, %v186_v30  ;;  %v1486_v39 = vsub.f32 (!%p112_p2), %v1432_v20, %v189_v31  ;;  %v1507_v45 = vpack.c.bf16 (!%p112_p2), %v180_v13, %v177_v12 }
   0xd   : > { %s1764_s10 = smov (!%p1387_p3, %s859_s10), 1  ;;  %v1500_v43 = vsub.f32 %v1437_v21, %v192_v33  ;;  %v1503_v44 = vsub.f32 %v1442_v22, %v195_v34  ;;  %v1510_v46 = vsub.f32 %v1454_v26, %v198_v35  ;;  %v204_v47 = vand.u32 4294901760, %v1479_v36 }
   0xe   : > { %s864_s6 = sshll.u32 %s1764_s10, 3  ;;  %1261 = vmatpush3.bf16.msra.mxu0 %v1445_v23  ;;  %1189 = vmatpush3.bf16.msra.mxu1 %v1445_v23  ;;  %v1516_v48 = vsub.f32 %v1459_v27, %v201_v40  ;;  %v207_v49 = vand.u32 4294901760, %v1492_v41  ;;  %v210_v50 = vand.u32 4294901760, %v1497_v42  ;;  %v1362_v52 = vmov 0.0  }
   0xf   : > { %s134_s15 = scalar_lea.vmem %s1759_s0, %s864_s6  ;;  %1262 = vmatprep.subr.bf16.mxu0 %v1360_v4  ;;  %1190 = vmatprep.subr.bf16.mxu1 %v1360_v4  ;;  %v1523_v51 = vsub.f32 %v1479_v36, %v204_v47  ;;  %v258_v53 = vand.u32 4294901760, %v1423_v17  ;;  %v265_v54 = vand.u32 4294901760, %v1425_v18  ;;  %v1531_v55 = vpack.c.bf16 %v186_v30, %v183_v29  ;;  %s138_s24 = scalar_lea.vmem %s1761_s2, %s864_s6 }
  0x10   : > { %v139_v32 = vld [vmem:[%s134_s15] sm:$0xff]  ;;  %1111 = vmatprep.mubr.msk.f32.mxu0 %vm1361_vm0, %v1362_v52  ;;  %1006 = vmatprep.mubr.msk.f32.mxu1 %vm1361_vm0, %v1362_v52  ;;  %v1536_v56 = vsub.f32 %v1492_v41, %v207_v49  ;;  %v1541_v57 = vsub.f32 %v1497_v42, %v210_v50  ;;  %v272_v61 = vand.u32 4294901760, %v1427_v19  ;;  %v279_v62 = vand.u32 4294901760, %v1447_v24 }
  0x11   : > { %143 = vperm.xlu0 %1350, %v139_v32   ;;  %v1545_v58 = vpack.c.bf16 %v265_v54, %v258_v53  ;;  %v259_v59 = vsub.f32 %v1423_v17, %v258_v53  ;;  %v266_v60 = vsub.f32 %v1425_v18, %v265_v54  ;;  %v1559_v5 = vpack.c.bf16 %v192_v33, %v189_v31 }
  0x12   : > { %1264 = vmatpush3.bf16.msra.mxu0 %v1507_v45  ;;  %1192 = vmatpush3.bf16.msra.mxu1 %v1507_v45  ;;  %v1553_v1 = vpack.c.bf16 %v279_v62, %v272_v61  ;;  %v273_v2 = vsub.f32 %v1427_v19, %v272_v61  ;;  %v280_v3 = vsub.f32 %v1447_v24, %v279_v62  ;;  %v286_v9 = vand.u32 4294901760, %v1449_v25 }
  0x13   : > { %1265 = vmatprep.subr.bf16.mxu0 %v1360_v4  ;;  %1193 = vmatprep.subr.bf16.mxu1 %v1360_v4  ;;  %v260_v63 = vand.u32 4294901760, %v259_v59  ;;  %v267_v0 = vand.u32 4294901760, %v266_v60  ;;  %v293_v10 = vand.u32 4294901760, %v1468_v28  ;;  %v1575_v15 = vpack.c.bf16 %v198_v35, %v195_v34 }
  0x14   : > { %v274_v7 = vand.u32 4294901760, %v273_v2  ;;  %v281_v8 = vand.u32 4294901760, %v280_v3  ;;  %v287_v13 = vsub.f32 %v1449_v25, %v286_v9  ;;  %v300_v22 = vand.u32 4294901760, %v1481_v37 }
  0x15   : > { %v1561_v6 = vpack.c.bf16 %v267_v0, %v260_v63  ;;  %v1569_v12 = vpack.c.bf16 %v293_v10, %v286_v9  ;;  %v294_v14 = vsub.f32 %v1468_v28, %v293_v10  ;;  %v307_v26 = vand.u32 4294901760, %v1483_v38 }
  0x16   : > { %1267 = vmatpush3.bf16.msra.mxu0 %v1531_v55  ;;  %1195 = vmatpush3.bf16.msra.mxu1 %v1531_v55  ;;  %v1567_v11 = vpack.c.bf16 %v281_v8, %v274_v7  ;;  %v288_v20 = vand.u32 4294901760, %v287_v13  ;;  %v301_v31 = vsub.f32 %v1481_v37, %v300_v22  ;;  %v1591_v33 = vpack.c.bf16 %v204_v47, %v201_v40 }
  0x17   : > { %1268 = vmatprep.subr.bf16.mxu0 %v1360_v4  ;;  %1196 = vmatprep.subr.bf16.mxu1 %v1360_v4  ;;  %v295_v21 = vand.u32 4294901760, %v294_v14  ;;  %v1583_v30 = vpack.c.bf16 %v307_v26, %v300_v22  ;;  %v308_v32 = vsub.f32 %v1483_v38, %v307_v26  ;;  %v314_v36 = vand.u32 4294901760, %v1486_v39 }
  0x18   : > { %v302_v34 = vand.u32 4294901760, %v301_v31  ;;  %v321_v53 = vand.u32 4294901760, %v1500_v43  ;;  %v1609_v40 = vpack.c.bf16 %v210_v50, %v207_v49  ;;  %v328_v62 = vand.u32 4294901760, %v1503_v44 }
  0x19   : > { %v1581_v29 = vpack.c.bf16 %v295_v21, %v288_v20  ;;  %v309_v35 = vand.u32 4294901760, %v308_v32  ;;  %v315_v60 = vsub.f32 %v1486_v39, %v314_v36  ;;  %v335_v63 = vand.u32 4294901760, %v1510_v46 }
  0x1a   : > { %1270 = vmatpush3.bf16.msra.mxu0 %v1559_v5  ;;  %1198 = vmatpush3.bf16.msra.mxu1 %v1559_v5  ;;  %v1599_v59 = vpack.c.bf16 %v321_v53, %v314_v36  ;;  %v322_v27 = vsub.f32 %v1500_v43, %v321_v53  ;;  %v329_v41 = vsub.f32 %v1503_v44, %v328_v62  ;;  %v342_v3 = vand.u32 4294901760, %v1516_v48 }
  0x1b   : > { %1271 = vmatprep.subr.bf16.mxu0 %v1360_v4  ;;  %1199 = vmatprep.subr.bf16.mxu1 %v1360_v4  ;;  %v1597_v54 = vpack.c.bf16 %v309_v35, %v302_v34  ;;  %v316_v47 = vand.u32 4294901760, %v315_v60  ;;  %v1617_v2 = vpack.c.bf16 %v335_v63, %v328_v62  ;;  %v336_v42 = vsub.f32 %v1510_v46, %v335_v63 }
  0x1c   : > { %v323_v61 = vand.u32 4294901760, %v322_v27  ;;  %v330_v49 = vand.u32 4294901760, %v329_v41  ;;  %v349_v7 = vand.u32 4294901760, %v1523_v51  ;;  %v343_v10 = vsub.f32 %v1516_v48, %v342_v3 }
  0x1d   : > { %v337_v50 = vand.u32 4294901760, %v336_v42  ;;  %v356_v21 = vand.u32 4294901760, %v1536_v56  ;;  %v363_v22 = vand.u32 4294901760, %v1541_v57  ;;  %v1233_v60 = vpack.c.bf16 %v1425_v18, %v1423_v17 }
  0x1e   : > { %1273 = vmatpush3.bf16.msra.mxu0 %v1575_v15  ;;  %1201 = vmatpush3.bf16.msra.mxu1 %v1575_v15  ;;  %v1615_v0 = vpack.c.bf16 %v323_v61, %v316_v47  ;;  %v1299_v9 = vpack.c.bf16 %v349_v7, %v342_v3  ;;  %v350_v13 = vsub.f32 %v1523_v51, %v349_v7  ;;  %v344_v14 = vand.u32 4294901760, %v343_v10 }
  0x1f   : > { %1274 = vmatprep.subr.bf16.mxu0 %v1360_v4  ;;  %1202 = vmatprep.subr.bf16.mxu1 %v1360_v4  ;;  %v1224_v8 = vpack.c.bf16 %v337_v50, %v330_v49  ;;  %v1302_v31 = vpack.c.bf16 %v363_v22, %v356_v21  ;;  %v357_v32 = vsub.f32 %v1536_v56, %v356_v21  ;;  %v140_v18 = vlaneseq }
  0x20   : > { %v351_v20 = vand.u32 4294901760, %v350_v13  ;;  %v364_v34 = vsub.f32 %v1541_v57, %v363_v22  ;;  %v1236_v27 = vpack.c.bf16 %v1447_v24, %v1427_v19  ;;  %v1239_v47 = vpack.c.bf16 %v1468_v28, %v1449_v25 }
  0x21   : > { %v358_v35 = vand.u32 4294901760, %v357_v32  ;;  %v1242_v61 = vpack.c.bf16 %v1483_v38, %v1481_v37  ;;  %v1245_v62 = vpack.c.bf16 %v1500_v43, %v1486_v39  ;;  %v1248_v63 = vpack.c.bf16 %v1510_v46, %v1503_v44 }
  0x22   : > { %1276 = vmatpush3.bf16.msra.mxu0 %v1591_v33  ;;  %1204 = vmatpush3.bf16.msra.mxu1 %v1591_v33  ;;  %v1227_v26 = vpack.c.bf16 %v351_v20, %v344_v14  ;;  %v365_v36 = vand.u32 4294901760, %v364_v34  ;;  %v1251_v41 = vpack.c.bf16 %v1523_v51, %v1516_v48  ;;  %v1254_v17 = vpack.c.bf16 %v1541_v57, %v1536_v56 }
  0x23   : > { %1277 = vmatprep.subr.bf16.mxu0 %v1360_v4  ;;  %1205 = vmatprep.subr.bf16.mxu1 %v1360_v4  ;;  %v1649_v42 = vand.u32 127, %v140_v18 }
  0x24   : > { %v1230_v53 = vpack.c.bf16 %v365_v36, %v358_v35 }
  0x26   : > { %1279 = vmatpush3.bf16.msra.mxu0 %v1609_v40  ;;  %1207 = vmatpush3.bf16.msra.mxu1 %v1609_v40 }
  0x27   : > { %1280 = vmatprep.subr.bf16.mxu0 %v1360_v4  ;;  %1208 = vmatprep.subr.bf16.mxu1 %v1360_v4 }
  0x90   : > { %v1651_v49 = vpop.permute.xlu0 %143 }
  0x91   : > { %vm145_vm1 = vcmp.eq.s32.totalorder %v1651_v49, %v1649_v42 }
  0x92   : > { %v866_v50 = vsel %vm145_vm1, 1.0, %v1362_v52 }
  0x93   : > { %v1659_v3 = vsub.f32 %v866_v50, %v866_v50 }
  0x95   : > { %v247_v7 = vand.u32 4294901760, %v1659_v3 }
  0x97   : > { %1112 = vmatmul.mubr.f32.vlgmr.msra.gmra.mrb[0].mxu0 %v247_v7  ;;  %v248_v10 = vsub.f32 %v1659_v3, %v247_v7 }
  0x98   : > { %1282 = vmatpush3.bf16.msra.mxu0 %v1545_v58  ;;  %1146 = vmatprep.mubr.msk.f32.mxu0 %vm1361_vm0, %v1362_v52  ;;  %v1363_v58 = vmov 1.0  }
  0x99   : > { %1283 = vmatprep.subr.bf16.mxu0 %v1360_v4  ;;  %v249_v13 = vand.u32 4294901760, %v248_v10 }
  0x9b   : > { %1007 = vmatmul.mubr.f32.vlgmr.msra.gmra.mrb[0].mxu1 %v249_v13 }
  0x9c   : > { %1210 = vmatpush3.bf16.msra.mxu1 %v1561_v6  ;;  %1285 = vmatpush3.bf16.msra.mxu0 %v1553_v1 }
  0x9d   : > { %1211 = vmatprep.subr.bf16.mxu1 %v1360_v4  ;;  %1286 = vmatprep.subr.bf16.mxu0 %v1360_v4 }
  0x9e   : > { %1041 = vmatprep.mubr.msk.f32.mxu1 %vm1361_vm0, %v1362_v52 }
  0xa0   : > { %1213 = vmatpush3.bf16.msra.mxu1 %v1567_v11  ;;  %1288 = vmatpush3.bf16.msra.mxu0 %v1569_v12 }
  0xa1   : > { %1214 = vmatprep.subr.bf16.mxu1 %v1360_v4  ;;  %1289 = vmatprep.subr.bf16.mxu0 %v1360_v4 }
  0xa4   : > { %1216 = vmatpush3.bf16.msra.mxu1 %v1581_v29  ;;  %1291 = vmatpush3.bf16.msra.mxu0 %v1583_v30 }
  0xa5   : > { %1217 = vmatprep.subr.bf16.mxu1 %v1360_v4  ;;  %1292 = vmatprep.subr.bf16.mxu0 %v1360_v4 }
  0xa8   : > { %1219 = vmatpush3.bf16.msra.mxu1 %v1597_v54  ;;  %1294 = vmatpush3.bf16.msra.mxu0 %v1599_v59 }
  0xa9   : > { %1220 = vmatprep.subr.bf16.mxu1 %v1360_v4  ;;  %1295 = vmatprep.subr.bf16.mxu0 %v1360_v4 }
  0xac   : > { %1222 = vmatpush3.bf16.msra.mxu1 %v1615_v0  ;;  %1297 = vmatpush3.bf16.msra.mxu0 %v1617_v2 }
  0xad   : > { %1223 = vmatprep.subr.bf16.mxu1 %v1360_v4  ;;  %1298 = vmatprep.subr.bf16.mxu0 %v1360_v4 }
  0xb0   : > { %1225 = vmatpush3.bf16.msra.mxu1 %v1224_v8  ;;  %1300 = vmatpush3.bf16.msra.mxu0 %v1299_v9 }
  0xb1   : > { %1226 = vmatprep.subr.bf16.mxu1 %v1360_v4  ;;  %1301 = vmatprep.subr.bf16.mxu0 %v1360_v4 }
  0xb4   : > { %1228 = vmatpush3.bf16.msra.mxu1 %v1227_v26  ;;  %1303 = vmatpush3.bf16.msra.mxu0 %v1302_v31 }
  0xb5   : > { %1229 = vmatprep.subr.bf16.mxu1 %v1360_v4  ;;  %1304 = vmatprep.subr.bf16.mxu0 %v1360_v4 }
  0xb7   : > { %1147 = vmatmul.mubr.msk.f32.vlgmr.msra.gmra.mrb[0].mxu0 %vm145_vm1, %v1363_v58 }
  0xb8   : > { %1231 = vmatpush3.bf16.msra.mxu1 %v1230_v53  ;;  %1306 = vmatpush3.bf16.msra.mxu0 %v1421_v16 }
  0xb9   : > { %1232 = vmatprep.subr.bf16.mxu1 %v1360_v4  ;;  %1307 = vmatprep.subr.bf16.mxu0 %v1360_v4 }
  0xba   : > { %1181 = vmatprep.mubr.msk.f32.mxu0 %vm1361_vm0, %v1362_v52 }
  0xbb   : > { %1042 = vmatmul.mubr.msk.f32.vlgmr.msra.gmra.mrb[0].mxu1 %vm145_vm1, %v1363_v58 }
  0xbc   : > { %1234 = vmatpush3.bf16.msra.mxu1 %v1233_v60  ;;  %1309 = vmatpush3.bf16.msra.mxu0 %v1445_v23 }
  0xbd   : > { %1235 = vmatprep.subr.bf16.mxu1 %v1360_v4  ;;  %1310 = vmatprep.subr.bf16.mxu0 %v1360_v4 }
  0xbe   : > { %1076 = vmatprep.mubr.msk.f32.mxu1 %vm1361_vm0, %v1362_v52 }
  0xc0   : > { %1237 = vmatpush3.bf16.msra.mxu1 %v1236_v27  ;;  %1312 = vmatpush3.bf16.msra.mxu0 %v1507_v45 }
  0xc1   : > { %1238 = vmatprep.subr.bf16.mxu1 %v1360_v4  ;;  %1313 = vmatprep.subr.bf16.mxu0 %v1360_v4 }
  0xc4   : > { %1240 = vmatpush3.bf16.msra.mxu1 %v1239_v47  ;;  %1315 = vmatpush3.bf16.msra.mxu0 %v1531_v55 }
  0xc5   : > { %1241 = vmatprep.subr.bf16.mxu1 %v1360_v4  ;;  %1316 = vmatprep.subr.bf16.mxu0 %v1360_v4 }
  0xc8   : > { %1243 = vmatpush3.bf16.msra.mxu1 %v1242_v61  ;;  %1318 = vmatpush3.bf16.msra.mxu0 %v1559_v5 }
  0xc9   : > { %1244 = vmatprep.subr.bf16.mxu1 %v1360_v4  ;;  %1319 = vmatprep.subr.bf16.mxu0 %v1360_v4 }
  0xcc   : > { %1246 = vmatpush3.bf16.msra.mxu1 %v1245_v62  ;;  %1321 = vmatpush3.bf16.msra.mxu0 %v1575_v15 }
  0xcd   : > { %1247 = vmatprep.subr.bf16.mxu1 %v1360_v4  ;;  %1322 = vmatprep.subr.bf16.mxu0 %v1360_v4 }
  0xd0   : > { %1249 = vmatpush3.bf16.msra.mxu1 %v1248_v63  ;;  %1324 = vmatpush3.bf16.msra.mxu0 %v1591_v33 }
  0xd1   : > { %1250 = vmatprep.subr.bf16.mxu1 %v1360_v4  ;;  %1325 = vmatprep.subr.bf16.mxu0 %v1360_v4 }
  0xd4   : > { %1252 = vmatpush3.bf16.msra.mxu1 %v1251_v41  ;;  %1327 = vmatpush3.bf16.msra.mxu0 %v1609_v40 }
  0xd5   : > { %1253 = vmatprep.subr.bf16.mxu1 %v1360_v4 }
  0xd7   : > { %1182 = vmatmul.mubr.msk.f32.vlgmr.msra.gmra.mrb[0].mxu0 %vm145_vm1, %v1363_v58 }
  0xd8   : > { %1255 = vmatpush3.bf16.msra.mxu1 %v1254_v17 }
  0xdb   : > { %1077 = vmatmul.mubr.f32.vlgmr.msra.gmra.mrb[0].mxu1 %v1659_v3 }
 0x1aa   : > { %v801_v16 = vpop.f32.mrb[0].mxu0 }
 0x1ab   : > { %v1183_v19 = vpop.f32.mrb[1].mxu0 }
 0x1ae   : > { %v506_v23 = vpop.f32.mrb[0].mxu1 }
 0x1af   : > { %v1328_v24 = vadd.f32 %v801_v16, %v506_v23  ;;  %v1078_v4 = vpop.f32.mrb[1].mxu1 }
 0x1b1   : > { %805 = vst [vmem:[%s138_s24] sm:$0xff] %v1328_v24 }
 0x1b2 PF: > { %s12_s9 = sadd.s32 1, %s1357_s9  }
 0x1b3   : > { %p9_p4 = scmp.ge.s32.totalorder %s12_s9, 4  }
 0x1b5   :  { %11 = sbr.rel (!%p9_p4) target bundleno = 1 (0x1), region = 58 }

</bundles_post_ra>
